<compile_context>
chip_gen: v5e
topology: v5e:2x2
jax: 0.10.0
libtpu: 0.0.40
codegen_flags: <defaults>
</compile_context>

<pallas_src>
import functools

import jax
import jax.numpy as jnp
from jax.experimental import pallas as pl
from jax.experimental.pallas import tpu as pltpu

_TEMPERATURE = 50.0
_INV_T = 1.0 / _TEMPERATURE
_LANES = 128
# Per-input VMEM block target: 3 inputs x 2 pipeline buffers x 4 MiB = 24 MiB.
_PER_INPUT_BLOCK_BYTES = 4 * 1024 * 1024
_VMEM_LIMIT_BYTES = 48 * 1024 * 1024


def _round_up(x, m):
    return (x + m - 1) // m * m


def _sublane_align(itemsize):
    # f32 -> 8, bf16 -> 16, int8/fp8 -> 32 (sub-32-bit dtypes pack sublanes).
    return max(8, 32 // itemsize)


def _pick_tile_rows(n_rows, row_width, itemsize, align, block_bytes):
    """Rows per input block targeting ~block_bytes of VMEM per buffer."""
    vmem_row_bytes = _round_up(row_width, _LANES) * itemsize  # lane-padded row
    tr = block_bytes // max(1, vmem_row_bytes)
    tr = (tr // align) * align
    tr = max(align, tr)
    # A single tile already covers all rows -> don't allocate more than needed
    # (the tail beyond n_rows is masked in-kernel).
    tr = min(tr, _round_up(max(n_rows, 1), align))
    return tr


def _softplus(x):
    # Stable softplus: max(x, 0) + log(1 + exp(-|x|)); all elementwise ops.
    return jnp.maximum(x, 0.0) + jnp.log(1.0 + jnp.exp(-jnp.abs(x)))


def _gcl_rowtile_kernel(img_ref, pos_ref, neg_ref, out_ref, *, batch, tile_rows):
    """General path: tiles of (tile_rows, D), D on the lane axis."""
    pid = pl.program_id(0)
    img = img_ref[...].astype(jnp.float32)
    pos = pos_ref[...].astype(jnp.float32)
    neg = neg_ref[...].astype(jnp.float32)

    # dot_neg - dot_pos == sum_d img * (neg - pos)
    diff = jnp.sum(img * (neg - pos), axis=-1, keepdims=True)       # (TR, 1)
    loss = _softplus(diff * jnp.float32(_INV_T))                    # (TR, 1)

    # Mask tail-block rows (beyond the real batch); garbage/NaN there is safe
    # because jnp.where is a select and the mask precedes the tile sum.
    row = pid * tile_rows + jax.lax.broadcasted_iota(jnp.int32, loss.shape, 0)
    loss = jnp.where(row < batch, loss, 0.0)
    out_ref[0, 0] = jnp.sum(loss)                                   # per-tile partial


def _gcl_packed_kernel(img_ref, pos_ref, neg_ref, seg_ref, out_ref, *,
                       batch, tile_rows, groups):
    """Lane-dense path for D < 128: tiles of (tile_rows, 128) packed rows,
    each 128-lane row holds `groups` consecutive batch embeddings."""
    pid = pl.program_id(0)
    img = img_ref[...].astype(jnp.float32)
    pos = pos_ref[...].astype(jnp.float32)
    neg = neg_ref[...].astype(jnp.float32)

    prod = img * (neg - pos)                                        # (TR, 128)

    # Segment-sum each D-wide lane chunk via a tiny resident matmul on the MXU
    # (seg is a constant (128, G) selection matrix kept in VMEM across steps).
    diff = jnp.dot(prod, seg_ref[...],
                   preferred_element_type=jnp.float32)              # (TR, G)
    loss = _softplus(diff * jnp.float32(_INV_T))                    # (TR, G)

    r = jax.lax.broadcasted_iota(jnp.int32, loss.shape, 0)
    g = jax.lax.broadcasted_iota(jnp.int32, loss.shape, 1)
    bidx = (pid * tile_rows + r) * groups + g
    loss = jnp.where(bidx < batch, loss, 0.0)                       # mask pad + tail
    out_ref[0, 0] = jnp.sum(loss)                                   # per-tile partial


def global_contrastive_loss(global_img, global_pos, global_neg,
                            *, block_bytes_per_input=None):
    assert global_img.shape == global_pos.shape == global_neg.shape, \
        "input shapes should be the same"
    assert global_img.ndim == 3 and global_img.shape[2] == 1, \
        "reference .view() calls require shape (B, D, 1)"

    B, D, _ = global_img.shape
    block_bytes = (_PER_INPUT_BLOCK_BYTES if block_bytes_per_input is None
                   else int(block_bytes_per_input))

    # Glue: drop the singleton spatial axis -> (B, D). Keep the native dtype
    # (bf16 stays bf16 in HBM; the kernel casts to f32 internally).
    img = jnp.squeeze(global_img, axis=-1)
    pos = jnp.squeeze(global_pos, axis=-1)
    neg = jnp.squeeze(global_neg, axis=-1)

    itemsize = jnp.dtype(img.dtype).itemsize
    align = _sublane_align(itemsize)
    use_packed = (D < _LANES) and (_LANES % D == 0)

    if use_packed:
        groups = _LANES // D
        # Pad B only up to a multiple of `groups` (at most groups-1 rows) so the
        # lane-dense reshape is valid; no tile-sized padding.
        b_pad = _round_up(B, groups)
        if b_pad != B:
            pad = b_pad - B
            img = jnp.pad(img, ((0, pad), (0, 0)))
            pos = jnp.pad(pos, ((0, pad), (0, 0)))
            neg = jnp.pad(neg, ((0, pad), (0, 0)))
        packed_rows = b_pad // groups
        img = img.reshape(packed_rows, _LANES)
        pos = pos.reshape(packed_rows, _LANES)
        neg = neg.reshape(packed_rows, _LANES)

        tile_rows = _pick_tile_rows(packed_rows, _LANES, itemsize, align,
                                    block_bytes)
        num_tiles = pl.cdiv(packed_rows, tile_rows)
        width = _LANES

        # Hoisted lane->group selection matrix (stays resident in VMEM since
        # its index_map always returns block (0, 0)).
        seg = (jnp.arange(_LANES)[:, None] // D
               == jnp.arange(groups)[None, :]).astype(jnp.float32)  # (128, G)

        kernel = functools.partial(_gcl_packed_kernel, batch=B,
                                   tile_rows=tile_rows, groups=groups)
        stream_spec = pl.BlockSpec((tile_rows, width), lambda i: (i, 0))
        in_specs = [stream_spec, stream_spec, stream_spec,
                    pl.BlockSpec((_LANES, groups), lambda i: (0, 0))]
        inputs = (img, pos, neg, seg)
    else:
        tile_rows = _pick_tile_rows(B, D, itemsize, align, block_bytes)
        num_tiles = pl.cdiv(B, tile_rows)
        width = D
        kernel = functools.partial(_gcl_rowtile_kernel, batch=B,
                                   tile_rows=tile_rows)
        stream_spec = pl.BlockSpec((tile_rows, width), lambda i: (i, 0))
        in_specs = [stream_spec, stream_spec, stream_spec]
        inputs = (img, pos, neg)

    partials = pl.pallas_call(
        kernel,
        out_shape=jax.ShapeDtypeStruct((num_tiles, 1), jnp.float32),
        grid=(num_tiles,),
        in_specs=in_specs,
        out_specs=pl.BlockSpec((1, 1), lambda i: (i, 0),
                               memory_space=pltpu.SMEM),
        compiler_params=pltpu.CompilerParams(
            dimension_semantics=("parallel",),
            vmem_limit_bytes=_VMEM_LIMIT_BYTES),
    )(*inputs)

    # Sum of per-row losses across all tiles, divided by B exactly once.
    return jnp.sum(partials) / jnp.float32(B)


def _reference(global_img, global_pos, global_neg):
    # Pure-JAX re-statement of the PyTorch forward (N == 1 path).
    T = _TEMPERATURE
    q = jnp.squeeze(global_img, -1).astype(jnp.float32)
    p = jnp.squeeze(global_pos, -1).astype(jnp.float32)
    n = jnp.squeeze(global_neg, -1).astype(jnp.float32)
    dot_pos = jnp.sum(q * p, axis=-1)
    dot_neg = jnp.sum(q * n, axis=-1)
    exp_pos = jnp.exp(dot_pos / T)
    exp_neg = jnp.exp(dot_neg / T)
    return jnp.mean(-jnp.log(exp_pos / (exp_pos + exp_neg)))


def _check(loss, ref, tag):
    assert jnp.allclose(loss, ref, atol=1e-5, rtol=1e-5), (tag, loss, ref)


if __name__ == "__main__":
    key = jax.random.PRNGKey(0)
    keys = jax.random.split(key, 12)

    # Case 1: small D (< 128), B not a multiple of groups -> packed path with
    # the tiny groups-pad, single tail tile (block rows > data rows, masked).
    B, D = 2, 32
    gi = jax.random.normal(keys[0], (B, D, 1), dtype=jnp.float32)
    gp = jax.random.normal(keys[1], (B, D, 1), dtype=jnp.float32)
    gn = jax.random.normal(keys[2], (B, D, 1), dtype=jnp.float32)
    loss = jax.block_until_ready(global_contrastive_loss(gi, gp, gn))
    _check(loss, _reference(gi, gp, gn), "case1")

    # Case 2: D >= 128, B not sublane-aligned -> row-tiled path, unpadded
    # inputs, single tail tile masked in-kernel.
    B2, D2 = 10, 256
    gi2 = jax.random.normal(keys[3], (B2, D2, 1), dtype=jnp.float32)
    gp2 = jax.random.normal(keys[4], (B2, D2, 1), dtype=jnp.float32)
    gn2 = jax.random.normal(keys[5], (B2, D2, 1), dtype=jnp.float32)
    loss2 = jax.block_until_ready(global_contrastive_loss(gi2, gp2, gn2))
    _check(loss2, _reference(gi2, gp2, gn2), "case2")

    # Case 3: bf16, packed path, small block override to force multiple grid
    # tiles + a tail tile (exercises the SMEM partial-sum reduction).
    B3, D3 = 200, 32
    gi3 = jax.random.normal(keys[6], (B3, D3, 1), dtype=jnp.bfloat16)
    gp3 = jax.random.normal(keys[7], (B3, D3, 1), dtype=jnp.bfloat16)
    gn3 = jax.random.normal(keys[8], (B3, D3, 1), dtype=jnp.bfloat16)
    loss3 = jax.block_until_ready(
        global_contrastive_loss(gi3, gp3, gn3, block_bytes_per_input=8 * 1024))
    _check(loss3, _reference(gi3, gp3, gn3), "case3")

    # Case 4: bf16, row-tiled path, multi-tile grid with a partial tail tile.
    B4, D4 = 100, 128
    gi4 = jax.random.normal(keys[9], (B4, D4, 1), dtype=jnp.bfloat16)
    gp4 = jax.random.normal(keys[10], (B4, D4, 1), dtype=jnp.bfloat16)
    gn4 = jax.random.normal(keys[11], (B4, D4, 1), dtype=jnp.bfloat16)
    loss4 = jax.block_until_ready(
        global_contrastive_loss(gi4, gp4, gn4, block_bytes_per_input=8 * 1024))
    _check(loss4, _reference(gi4, gp4, gn4), "case4")

    print("KERNEL_OK")
</pallas_src>

<mosaic_0001>
module attributes {stable_mosaic.version = 11 : i64} {
  func.func @_gcl_packed_kernel(%arg0: i32, %arg1: memref<8x128xf32, #tpu.memory_space<vmem>>, %arg2: memref<8x128xf32, #tpu.memory_space<vmem>>, %arg3: memref<8x128xf32, #tpu.memory_space<vmem>>, %arg4: memref<128x4xf32, #tpu.memory_space<vmem>>, %arg5: memref<1x1xf32, #tpu.memory_space<smem>>) attributes {dimension_semantics = [#tpu.dimension_semantics<parallel>], iteration_bounds = array<i64: 1>, scalar_prefetch = 0 : i64, scratch_operands = 0 : i64, tpu.core_type = #tpu.core_type<tc>, window_params = [{transform_indices = @transform_0, window_bounds = array<i64: 8, 128>}, {transform_indices = @transform_1, window_bounds = array<i64: 8, 128>}, {transform_indices = @transform_2, window_bounds = array<i64: 8, 128>}, {pipeline_mode = #tpu.pipeline_mode<synchronous>, transform_indices = @transform_3, window_bounds = array<i64: 128, 4>}, {transform_indices = @transform_4, window_bounds = array<i64: 1, 1>}]} {
    %c0 = arith.constant 0 : index
    %c0_0 = arith.constant 0 : index
    %0 = vector.load %arg1[%c0, %c0_0] : memref<8x128xf32, #tpu.memory_space<vmem>>, vector<8x128xf32>
    %c0_1 = arith.constant 0 : index
    %c0_2 = arith.constant 0 : index
    %1 = vector.load %arg2[%c0_1, %c0_2] : memref<8x128xf32, #tpu.memory_space<vmem>>, vector<8x128xf32>
    %c0_3 = arith.constant 0 : index
    %c0_4 = arith.constant 0 : index
    %2 = vector.load %arg3[%c0_3, %c0_4] : memref<8x128xf32, #tpu.memory_space<vmem>>, vector<8x128xf32>
    %3 = arith.subf %2, %1 : vector<8x128xf32>
    %4 = arith.mulf %0, %3 : vector<8x128xf32>
    %c0_5 = arith.constant 0 : index
    %c0_6 = arith.constant 0 : index
    %5 = vector.load %arg4[%c0_5, %c0_6] : memref<128x4xf32, #tpu.memory_space<vmem>>, vector<128x4xf32>
    %cst = arith.constant dense<0.000000e+00> : vector<8x4xf32>
    %6 = tpu.matmul %4, %5, %cst {dimension_numbers = #tpu.dot_dimension_numbers<[1], [0], [0], [1], [0, 0, 1, 1], [], []>} : vector<8x128xf32>, vector<128x4xf32>, vector<8x4xf32> -> vector<8x4xf32>
    %cst_7 = arith.constant 2.000000e-02 : f32
    %7 = vector.broadcast %cst_7 : f32 to vector<8x4xf32>
    %8 = arith.mulf %6, %7 : vector<8x4xf32>
    %cst_8 = arith.constant 0.000000e+00 : f32
    %9 = vector.broadcast %cst_8 : f32 to vector<8x4xf32>
    %10 = arith.maximumf %8, %9 : vector<8x4xf32>
    %11 = math.absf %8 : vector<8x4xf32>
    %cst_9 = arith.constant 0.000000e+00 : f32
    %12 = vector.broadcast %cst_9 : f32 to vector<8x4xf32>
    %13 = arith.subf %12, %11 : vector<8x4xf32>
    %14 = math.exp %13 : vector<8x4xf32>
    %cst_10 = arith.constant 1.000000e+00 : f32
    %15 = vector.broadcast %cst_10 : f32 to vector<8x4xf32>
    %16 = arith.addf %15, %14 : vector<8x4xf32>
    %17 = math.log %16 : vector<8x4xf32>
    %18 = arith.addf %10, %17 : vector<8x4xf32>
    %19 = tpu.iota {dimensions = array<i32: 0>} : vector<8x4xi32>
    %20 = tpu.iota {dimensions = array<i32: 1>} : vector<8x4xi32>
    %c8_i32 = arith.constant 8 : i32
    %21 = arith.muli %arg0, %c8_i32 : i32
    %22 = vector.broadcast %21 : i32 to vector<8x4xi32>
    %23 = arith.addi %22, %19 : vector<8x4xi32>
    %c4_i32 = arith.constant 4 : i32
    %24 = vector.broadcast %c4_i32 : i32 to vector<8x4xi32>
    %25 = arith.muli %23, %24 : vector<8x4xi32>
    %26 = arith.addi %25, %20 : vector<8x4xi32>
    %c2_i32 = arith.constant 2 : i32
    %27 = vector.broadcast %c2_i32 : i32 to vector<8x4xi32>
    %28 = arith.cmpi slt, %26, %27 : vector<8x4xi32>
    %cst_11 = arith.constant 0.000000e+00 : f32
    %29 = vector.broadcast %cst_11 : f32 to vector<8x4xf32>
    %30 = arith.select %28, %18, %29 : vector<8x4xi1>, vector<8x4xf32>
    %31 = vector.shape_cast %30 : vector<8x4xf32> to vector<1x8x4xf32>
    %cst_12 = arith.constant dense<0.000000e+00> : vector<1xf32>
    %32 = vector.multi_reduction <add>, %31, %cst_12 [1, 2] : vector<1x8x4xf32> to vector<1xf32>
    %33 = vector.shape_cast %32 : vector<1xf32> to vector<1x1x1xf32>
    %34 = vector.extract %33[0, 0, 0] : f32 from vector<1x1x1xf32>
    %c0_13 = arith.constant 0 : index
    %c0_14 = arith.constant 0 : index
    %35 = memref.load %arg5[%c0_13, %c0_14] : memref<1x1xf32, #tpu.memory_space<smem>>
    memref.store %34, %arg5[%c0_13, %c0_14] : memref<1x1xf32, #tpu.memory_space<smem>>
    return
  }
  func.func @transform_0(%arg0: i32) -> (i32, i32) {
    %c0_i32 = arith.constant 0 : i32
    %c0_i32_0 = arith.constant 0 : i32
    return %arg0, %c0_i32 : i32, i32
  }
  func.func @transform_1(%arg0: i32) -> (i32, i32) {
    %c0_i32 = arith.constant 0 : i32
    %c0_i32_0 = arith.constant 0 : i32
    return %arg0, %c0_i32 : i32, i32
  }
  func.func @transform_2(%arg0: i32) -> (i32, i32) {
    %c0_i32 = arith.constant 0 : i32
    %c0_i32_0 = arith.constant 0 : i32
    return %arg0, %c0_i32 : i32, i32
  }
  func.func @transform_3(%arg0: i32) -> (i32, i32) {
    %c0_i32 = arith.constant 0 : i32
    %c0_i32_0 = arith.constant 0 : i32
    %c0_i32_1 = arith.constant 0 : i32
    return %c0_i32, %c0_i32_0 : i32, i32
  }
  func.func @transform_4(%arg0: i32) -> (i32, i32) {
    %c0_i32 = arith.constant 0 : i32
    %c0_i32_0 = arith.constant 0 : i32
    return %arg0, %c0_i32 : i32, i32
  }
}

</mosaic_0001>

<bundles_post_ra>
// kernel: tpu_custom_call.1
= control target key start
LH: loop header
LB: loop body
LE: loop exit
PB: predicated region body
PF: predicated region fallthrough
CT: control target
= control target key end

     0   :  { %s215_s0 = inlined_call_operand.vmem [shape: f32[1,128], index: 0, kind: input, shape index: {}]   ;;  %s216_s1 = inlined_call_operand.vmem [shape: f32[1,128], index: 1, kind: input, shape index: {}]   ;;  %s217_s2 = inlined_call_operand.vmem [shape: f32[1,128], index: 2, kind: input, shape index: {}]   ;;  %s218_s3 = inlined_call_operand.vmem [shape: f32[128,4], index: 3, kind: input, shape index: {}]   ;;  %s219_s4 = inlined_call_operand.hbm [shape: f32[1,1], index: 4, kind: output, shape index: {}]  }
   0x1   :  { %v38_v0 = vld [vmem:[%s218_s3 + $0x78] sm:$0xff]  ;;  %v37_v1 = vld [vmem:[%s218_s3 + $0x70] sm:$0xff]  ;;  %v36_v2 = vld [vmem:[%s218_s3 + $0x68] sm:$0xff] }
   0x2   :  { %39 = vmatpush.msra.mxu0 %v38_v0  ;;  %v35_v3 = vld [vmem:[%s218_s3 + $0x60] sm:$0xff]  ;;  %v34_v4 = vld [vmem:[%s218_s3 + $0x58] sm:$0xff] }
   0x4   :  { %40 = vmatpush.msra.mxu0 %v37_v1 }
   0x6   :  { %41 = vmatpush.msra.mxu0 %v36_v2 }
   0x7   :  { %9 = vsyncpa [#allocation3], 0  ;;  %v33_v5 = vld [vmem:[%s218_s3 + $0x50] sm:$0xff]  ;;  %v32_v6 = vld [vmem:[%s218_s3 + $0x48] sm:$0xff]  ;;  %v69_v26 = vlaneseq  ;;  %vm80_vm1 = vcmask 31744   ;;  %s98_s25 = sshll.u32 %s219_s4, 4  ;;  %s99_s25 = int_to_ptr.hbm [resolvable:$true] %s98_s25 }
   0x8   :  { %42 = vmatpush.msra.mxu0 %v35_v3  ;;  %v31_v7 = vld [vmem:[%s218_s3 + $0x40] sm:$0xff]  ;;  %v30_v8 = vld [vmem:[%s218_s3 + $0x38] sm:$0xff]  ;;  %v29_v9 = vld [vmem:[%s218_s3 + $0x30] sm:$0xff]  ;;  %s129_s27 = smov [#allocation2]  }
   0x9   :  { %v28_v10 = vld [vmem:[%s218_s3 + $0x28] sm:$0xff]  ;;  %v27_v11 = vld [vmem:[%s218_s3 + $0x20] sm:$0xff]  ;;  %v26_v14 = vld [vmem:[%s218_s3 + $0x18] sm:$0xff]  ;;  %v70_v27 = vshrl.u32 %v69_v26, 7  ;;  %v72_v30 = vand.u32 127, %v69_v26 }
   0xa   :  { %43 = vmatpush.msra.mxu0 %v34_v4  ;;  %v19_v12 = vld [vmem:[%s216_s1] sm:$0xff]  ;;  %v25_v15 = vld [vmem:[%s218_s3 + $0x10] sm:$0xff]  ;;  %v24_v18 = vld [vmem:[%s218_s3 + $0x8] sm:$0xff] }
   0xb   :  { %v20_v13 = vld [vmem:[%s217_s2] sm:$0xff]  ;;  %v76_v31 = vmul.u32 4, %v70_v27 }
   0xc   :  { %44 = vmatpush.msra.mxu0 %v33_v5  ;;  %v21_v16 = vsub.f32 %v20_v13, %v19_v12  ;;  %v18_v17 = vld [vmem:[%s215_s0] sm:$0xff] }
   0xd   :  { %v23_v19 = vld [vmem:[%s218_s3] sm:$0xff]  ;;  %v77_v32 = vadd.s32 %v76_v31, %v72_v30 }
   0xe   :  { %45 = vmatpush.msra.mxu0 %v32_v6  ;;  %v22_v20 = vmul.f32 %v21_v16, %v18_v17 }
   0xf   :  { %vm78_vm0 = vcmp.lt.s32.totalorder %v77_v32, 2 }
  0x10   :  { %46 = vmatpush.msra.mxu0 %v31_v7 }
  0x12   :  { %47 = vmatpush.msra.mxu0 %v30_v8 }
  0x14   :  { %48 = vmatpush.msra.mxu0 %v29_v9 }
  0x16   :  { %49 = vmatpush.msra.mxu0 %v28_v10 }
  0x18   :  { %50 = vmatpush.msra.mxu0 %v27_v11 }
  0x1a   :  { %51 = vmatpush.msra.mxu0 %v26_v14 }
  0x1c   :  { %52 = vmatpush.msra.mxu0 %v25_v15 }
  0x1e   :  { %53 = vmatpush.msra.mxu0 %v24_v18 }
  0x20   :  { %54 = vmatpush.msra.mxu0 %v23_v19 }
  0x21   :  { %55 = vmatmul.f32.vlgmr.msra.gmra.mxu0 %v22_v20 }
  0x9e   :  { %v56_v21 = vpop.f32.mrf.mxu0 }
  0x9f   :  { %v59_v22 = vmul.f32 0.02, %v56_v21 }
  0xa1   :  { %v61_v23 = vand.u32 2147483647, %v59_v22  ;;  %v60_v34 = vmax.f32 %v59_v22, 0.0 }
  0xa3   :  { %v62_v24 = vsub.f32 0.0, %v61_v23 }
  0xa5   :  { %v63_v25 = vmul.f32 1.442695, %v62_v24 }
  0xa7   :  { %111 = vpow2.f32 %v63_v25 }
  0xad   :  { %v112_v28 = vpop.eup %111 }
  0xae   :  { %v65_v29 = vadd.f32 1.0, %v112_v28 }
  0xb0   :  { %113 = vlog2.f32 %v65_v29 }
  0xb6   :  { %v114_v33 = vpop.eup %113 }
  0xb7   :  { %v67_v35 = vmul.f32 0.6931472, %v114_v33 }
  0xb9   :  { %v68_v36 = vadd.f32 %v67_v35, %v60_v34 }
  0xbb   :  { %v79_v37 = vsel %vm78_vm0, %v68_v36, 0.0 }
  0xbc   :  { %v81_v38 = vsel %vm80_vm1, %v79_v37, 0.0 }
  0xbd   :  { %82 = vadd.xlane.f32.xlu0 %v81_v38 }
 0x130   :  { %v83_v39 = vpop.xlane.xlu0 %82 }
 0x131   :  { %v84_v40 = vrot.slane %v83_v39, 4 }
 0x133   :  { %v85_v41 = vadd.f32 %v84_v40, %v83_v39 }
 0x135   :  { %v86_v42 = vrot.slane %v85_v41, 2 }
 0x137   :  { %v87_v43 = vadd.f32 %v86_v42, %v85_v41 }
 0x139   :  { %v88_v44 = vrot.slane %v87_v43, 1 }
 0x13b   :  { %v89_v45 = vadd.f32 %v88_v44, %v87_v43 }
 0x13d   :  { %108 = vpush %v89_v45 }
 0x16e   :  { %s109_s26 = spop %108 }
 0x16f   :  { %92 = sst [smem:[#allocation2]] %s109_s26 }
 0x170   :  { %101 = dma.smem_to_hbm %s129_s27, 16, %s99_s25, [#allocation3]  }
 0x171   :  { %127 = dma.done.wait [#allocation3], 16  }
 0x172   :  { %128 = vsyncadd [#allocation3], 4294967280 }
 0x173   :  { %106 = sfence }
 0x174   :  { %107 = vsyncpa [#allocation3], 1 }

</bundles_post_ra>
